<compile_context>
chip_gen: v7x
topology: tpu7x:2x2x1
jax: 0.10.0
libtpu: 0.0.40
codegen_flags: <defaults>
</compile_context>

<pallas_src>
import functools

import jax
import jax.numpy as jnp
from jax.experimental import pallas as pl
from jax.experimental.pallas import tpu as pltpu


def _dice_partial_kernel(score_ref, tgt_ref,
                         inter_ref, y_ref, z_ref,
                         inter_acc, y_acc, z_acc,
                         *, hw_valid, apply_softmax, needs_mask):
    j = pl.program_id(2)
    C = score_ref.shape[1]
    s_tile = score_ref.shape[2]

    @pl.when(j == 0)
    def _init():
        inter_acc[...] = jnp.zeros_like(inter_acc)
        y_acc[...] = jnp.zeros_like(y_acc)
        z_acc[...] = jnp.zeros_like(z_acc)

    s_raw = score_ref[0].astype(jnp.float32)        # (C, s_tile, 128) — upcast in-kernel
    t_raw = tgt_ref[0, 0].astype(jnp.int32)         # (s_tile, 128) — native dtype DMA

    cls = jax.lax.broadcasted_iota(jnp.int32, (C, 1, 1), 0)   # (C, 1, 1)

    def _accumulate(valid):
        s = s_raw
        t = t_raw
        if valid is not None:
            s = jnp.where(valid[None], s, 0.0)       # finite logits on padding lanes
            t = jnp.where(valid, t, jnp.int32(C))    # sentinel class: matches nothing
        if apply_softmax:
            m = jnp.max(s, axis=0, keepdims=True)            # per-vreg VPU max over C
            e = jnp.exp(s - m)                                # EUP
            s = e * pl.reciprocal(jnp.sum(e, axis=0, keepdims=True), approx=False)
            if valid is not None:
                s = jnp.where(valid[None], s, 0.0)   # keep padded pixels out of z_sum
        onehot = (t[None] == cls)                    # (C, s_tile, 128) bool, in-kernel
        # Per-step reduction to (C, 128) lane-partials; tiny accumulator stores only.
        inter_acc[...] += jnp.sum(jnp.where(onehot, s, 0.0), axis=1)
        y_acc[...] += jnp.sum(onehot.astype(jnp.float32), axis=1)   # == one-hot count
        z_acc[...] += jnp.sum(s * s, axis=1)

    if needs_mask:
        gt = pl.program_id(1) * pl.num_programs(2) + j              # global tile index
        last_gt = pl.num_programs(1) * pl.num_programs(2) - 1

        @pl.when(gt != last_gt)
        def _fast():
            _accumulate(None)

        @pl.when(gt == last_gt)
        def _ragged():
            row = jax.lax.broadcasted_iota(jnp.int32, (s_tile, 128), 0)
            lane = jax.lax.broadcasted_iota(jnp.int32, (s_tile, 128), 1)
            pix = (gt * s_tile + row) * 128 + lane
            _accumulate(pix < hw_valid)
    else:
        _accumulate(None)

    @pl.when(j == pl.num_programs(2) - 1)
    def _finalize():
        inter_ref[0, 0] = inter_acc[...]
        y_ref[0, 0] = y_acc[...]
        z_ref[0, 0] = z_acc[...]


def _pick_s_tile(S, s_cap):
    """Pick the per-step tile (in 128-lane rows): whole image if it fits, else the
    largest multiple-of-8 divisor of S (no masking), else fall back to a ragged tile."""
    s_cap = max(8, (s_cap // 8) * 8)
    if S <= s_cap:
        return S, False
    d = s_cap
    while d >= 8:
        if S % d == 0:
            return d, False
        d -= 8
    return s_cap, True


def dice_loss(inputs, target, weight=None, softmax=False):
    """Pallas implementation of DiceLoss.forward.

    inputs: (N, C, H, W) float (probabilities, or logits if softmax=True)
    target: (N, H, W) integer class labels in [0, C)
    """
    N, C, H, W = inputs.shape
    HW = H * W
    HW_pad = pl.cdiv(HW, 128) * 128

    score = inputs.reshape(N, C, HW)                 # free: native layout, no transpose
    tgt = target.reshape(N, 1, HW)                   # native dtype, no host-side astype
    if HW_pad != HW:
        # TODO(synk): rare fallback (HW not a multiple of 128); padded pixels are masked
        # inside the kernel, so the pad values never reach the sums.
        score = jnp.pad(score, ((0, 0), (0, 0), (0, HW_pad - HW)))
        tgt = jnp.pad(tgt, ((0, 0), (0, 0), (0, HW_pad - HW)))
    S = HW_pad // 128
    score = score.reshape(N, C, S, 128)
    tgt = tgt.reshape(N, 1, S, 128)

    # Generation-aware VMEM budget (v7x has 64 MiB physical; v5e/v6e have 128 MiB).
    try:
        phys_vmem = int(getattr(pltpu.get_tpu_info(), "vmem_capacity_bytes", 128 << 20))
    except Exception:
        phys_vmem = 128 << 20
    scoped_budget = int(min(phys_vmem // 3, 40 << 20))
    vmem_limit = int(min(phys_vmem // 2, 64 << 20))

    in_bytes = jnp.dtype(inputs.dtype).itemsize
    tgt_bytes = jnp.dtype(target.dtype).itemsize
    per_row_bytes = 128 * (2 * C * in_bytes + 2 * tgt_bytes)   # double-buffered inputs
    fixed_bytes = 9 * C * 128 * 4 + (1 << 20)                  # acc + outputs + slack
    s_cap = max(8, (scoped_budget - fixed_bytes) // per_row_bytes)

    s_tile, ragged = _pick_s_tile(S, int(s_cap))
    needs_mask = ragged or (HW_pad != HW)

    num_tiles = pl.cdiv(S, s_tile)
    # v7x: give both TensorCores work even at batch 1 by splitting the spatial tiles.
    P = 2 if (N == 1 and num_tiles >= 2 and num_tiles % 2 == 0) else 1
    tiles_per_chunk = num_tiles // P

    kernel = functools.partial(
        _dice_partial_kernel,
        hw_valid=HW, apply_softmax=bool(softmax), needs_mask=needs_mask)

    partial_struct = jax.ShapeDtypeStruct((N, P, C, 128), jnp.float32)
    out_spec = pl.BlockSpec((1, 1, C, 128), lambda n, p, j: (n, p, 0, 0))

    inter_p, y_p, z_p = pl.pallas_call(
        kernel,
        out_shape=[partial_struct, partial_struct, partial_struct],
        grid_spec=pltpu.PrefetchScalarGridSpec(
            num_scalar_prefetch=0,
            grid=(N, P, tiles_per_chunk),
            in_specs=[
                pl.BlockSpec((1, C, s_tile, 128),
                             lambda n, p, j: (n, 0, p * tiles_per_chunk + j, 0)),
                pl.BlockSpec((1, 1, s_tile, 128),
                             lambda n, p, j: (n, 0, p * tiles_per_chunk + j, 0)),
            ],
            out_specs=[out_spec, out_spec, out_spec],
            scratch_shapes=[
                pltpu.VMEM((C, 128), jnp.float32),    # intersect lane-partials
                pltpu.VMEM((C, 128), jnp.float32),    # y_sum lane-partials
                pltpu.VMEM((C, 128), jnp.float32),    # z_sum lane-partials
            ],
        ),
        compiler_params=pltpu.CompilerParams(
            dimension_semantics=("parallel", "parallel", "arbitrary"),
            vmem_limit_bytes=vmem_limit,
        ),
    )(score, tgt)

    # Tiny O(C) epilogue in plain JAX: combine per-(sample, chunk) lane-partials.
    if weight is None:
        weight = [1.0] * C
    w = jnp.asarray(weight, jnp.float32)
    intersect = inter_p.sum(axis=(0, 1, 3))    # (C,)
    y_sum = y_p.sum(axis=(0, 1, 3))
    z_sum = z_p.sum(axis=(0, 1, 3))
    smooth = 1e-05
    dice = 1.0 - (2.0 * intersect + smooth) / (z_sum + y_sum + smooth)
    return jnp.sum(dice * w) / C


def _dice_loss_reference(inputs, target, weight=None, softmax=False):
    """Pure-JAX reference mirroring the PyTorch module."""
    N, C, H, W = inputs.shape
    if softmax:
        inputs = jax.nn.softmax(inputs, axis=1)
    if weight is None:
        weight = [1.0] * C
    smooth = 1e-05
    loss = 0.0
    for i in range(C):
        score = inputs[:, i].astype(jnp.float32)
        tgt = (target == i).astype(jnp.float32)
        intersect = jnp.sum(score * tgt)
        y_sum = jnp.sum(tgt * tgt)
        z_sum = jnp.sum(score * score)
        dice = 1.0 - (2 * intersect + smooth) / (z_sum + y_sum + smooth)
        loss = loss + dice * weight[i]
    return loss / C


if __name__ == "__main__":
    key = jax.random.PRNGKey(0)
    k1, k2 = jax.random.split(key)

    N, C, H, W = 2, 4, 16, 16
    logits = jax.random.normal(k1, (N, C, H, W), dtype=jnp.float32)
    probs = jax.nn.softmax(logits, axis=1)
    target = jax.random.randint(k2, (N, H, W), 0, C, dtype=jnp.int32)

    # Path 1: module default (softmax=False) on pre-normalized probabilities.
    out = jax.block_until_ready(dice_loss(probs, target, weight=None, softmax=False))
    ref = _dice_loss_reference(probs, target, weight=None, softmax=False)
    assert jnp.allclose(out, ref, atol=1e-5, rtol=1e-5), (out, ref)

    # Path 2: fused in-kernel softmax on raw logits, with per-class weights.
    w = [0.5, 1.0, 1.5, 2.0]
    out2 = jax.block_until_ready(dice_loss(logits, target, weight=w, softmax=True))
    ref2 = _dice_loss_reference(logits, target, weight=w, softmax=True)
    assert jnp.allclose(out2, ref2, atol=1e-5, rtol=1e-5), (out2, ref2)

    print("KERNEL_OK")
</pallas_src>

<mosaic_0001>
module attributes {stable_mosaic.version = 11 : i64} {
  func.func @_dice_partial_kernel(%arg0: i32, %arg1: i32, %arg2: i32, %arg3: memref<1x4x2x128xf32, #tpu.memory_space<vmem>>, %arg4: memref<1x1x2x128xi32, #tpu.memory_space<vmem>>, %arg5: memref<1x1x4x128xf32, #tpu.memory_space<vmem>>, %arg6: memref<1x1x4x128xf32, #tpu.memory_space<vmem>>, %arg7: memref<1x1x4x128xf32, #tpu.memory_space<vmem>>, %arg8: memref<4x128xf32, #tpu.memory_space<vmem>>, %arg9: memref<4x128xf32, #tpu.memory_space<vmem>>, %arg10: memref<4x128xf32, #tpu.memory_space<vmem>>) attributes {dimension_semantics = [#tpu.dimension_semantics<parallel>, #tpu.dimension_semantics<parallel>, #tpu.dimension_semantics<arbitrary>], iteration_bounds = array<i64: 2, 1, 1>, scalar_prefetch = 0 : i64, scratch_operands = 3 : i64, tpu.core_type = #tpu.core_type<tc>, window_params = [{transform_indices = @transform_0, window_bounds = array<i64: 1, 4, 2, 128>}, {transform_indices = @transform_1, window_bounds = array<i64: 1, 1, 2, 128>}, {transform_indices = @transform_2, window_bounds = array<i64: 1, 1, 4, 128>}, {transform_indices = @transform_3, window_bounds = array<i64: 1, 1, 4, 128>}, {transform_indices = @transform_4, window_bounds = array<i64: 1, 1, 4, 128>}]} {
    %c0_i32 = arith.constant 0 : i32
    %0 = arith.cmpi eq, %arg2, %c0_i32 : i32
    %1 = arith.extui %0 : i1 to i32
    %c0_i32_0 = arith.constant 0 : i32
    %2 = arith.cmpi ne, %1, %c0_i32_0 : i32
    scf.if %2 {
      %cst_25 = arith.constant 0.000000e+00 : f32
      %32 = vector.broadcast %cst_25 : f32 to vector<4x128xf32>
      %c0_26 = arith.constant 0 : index
      %c0_27 = arith.constant 0 : index
      %33 = vector.load %arg8[%c0_26, %c0_27] : memref<4x128xf32, #tpu.memory_space<vmem>>, vector<4x128xf32>
      tpu.vector_store %arg8[%c0_26, %c0_27], %32 {strides = array<i32>} : memref<4x128xf32, #tpu.memory_space<vmem>>, vector<4x128xf32>,
      %cst_28 = arith.constant 0.000000e+00 : f32
      %34 = vector.broadcast %cst_28 : f32 to vector<4x128xf32>
      %c0_29 = arith.constant 0 : index
      %c0_30 = arith.constant 0 : index
      %35 = vector.load %arg9[%c0_29, %c0_30] : memref<4x128xf32, #tpu.memory_space<vmem>>, vector<4x128xf32>
      tpu.vector_store %arg9[%c0_29, %c0_30], %34 {strides = array<i32>} : memref<4x128xf32, #tpu.memory_space<vmem>>, vector<4x128xf32>,
      %cst_31 = arith.constant 0.000000e+00 : f32
      %36 = vector.broadcast %cst_31 : f32 to vector<4x128xf32>
      %c0_32 = arith.constant 0 : index
      %c0_33 = arith.constant 0 : index
      %37 = vector.load %arg10[%c0_32, %c0_33] : memref<4x128xf32, #tpu.memory_space<vmem>>, vector<4x128xf32>
      tpu.vector_store %arg10[%c0_32, %c0_33], %36 {strides = array<i32>} : memref<4x128xf32, #tpu.memory_space<vmem>>, vector<4x128xf32>,
    } else {
    }
    %c0 = arith.constant 0 : index
    %c0_1 = arith.constant 0 : index
    %c0_2 = arith.constant 0 : index
    %c0_3 = arith.constant 0 : index
    %3 = vector.load %arg3[%c0, %c0_1, %c0_2, %c0_3] : memref<1x4x2x128xf32, #tpu.memory_space<vmem>>, vector<1x4x2x128xf32>
    %4 = vector.shape_cast %3 : vector<1x4x2x128xf32> to vector<4x2x128xf32>
    %c0_4 = arith.constant 0 : index
    %c0_5 = arith.constant 0 : index
    %c0_6 = arith.constant 0 : index
    %c0_7 = arith.constant 0 : index
    %5 = vector.load %arg4[%c0_4, %c0_5, %c0_6, %c0_7] : memref<1x1x2x128xi32, #tpu.memory_space<vmem>>, vector<1x1x2x128xi32>
    %6 = vector.shape_cast %5 : vector<1x1x2x128xi32> to vector<2x128xi32>
    %7 = tpu.iota {dimensions = array<i32: 0>} : vector<4x1x1xi32>
    %8 = vector.shape_cast %6 : vector<2x128xi32> to vector<1x2x128xi32>
    %9 = vector.broadcast %8 : vector<1x2x128xi32> to vector<4x2x128xi32>
    %10 = vector.broadcast %7 : vector<4x1x1xi32> to vector<4x2x128xi32>
    %11 = arith.cmpi eq, %9, %10 : vector<4x2x128xi32>
    %c0_8 = arith.constant 0 : index
    %c0_9 = arith.constant 0 : index
    %12 = vector.load %arg8[%c0_8, %c0_9] : memref<4x128xf32, #tpu.memory_space<vmem>>, vector<4x128xf32>
    %cst = arith.constant 0.000000e+00 : f32
    %13 = vector.broadcast %cst : f32 to vector<4x2x128xf32>
    %14 = arith.select %11, %4, %13 : vector<4x2x128xi1>, vector<4x2x128xf32>
    %cst_10 = arith.constant dense<0.000000e+00> : vector<4x128xf32>
    %15 = vector.multi_reduction <add>, %14, %cst_10 [1] : vector<4x2x128xf32> to vector<4x128xf32>
    %16 = arith.addf %12, %15 : vector<4x128xf32>
    %c0_11 = arith.constant 0 : index
    %c0_12 = arith.constant 0 : index
    %17 = vector.load %arg8[%c0_11, %c0_12] : memref<4x128xf32, #tpu.memory_space<vmem>>, vector<4x128xf32>
    tpu.vector_store %arg8[%c0_11, %c0_12], %16 {strides = array<i32>} : memref<4x128xf32, #tpu.memory_space<vmem>>, vector<4x128xf32>,
    %c0_13 = arith.constant 0 : index
    %c0_14 = arith.constant 0 : index
    %18 = vector.load %arg9[%c0_13, %c0_14] : memref<4x128xf32, #tpu.memory_space<vmem>>, vector<4x128xf32>
    %19 = arith.extui %11 : vector<4x2x128xi1> to vector<4x2x128xi32>
    %20 = arith.sitofp %19 : vector<4x2x128xi32> to vector<4x2x128xf32>
    %cst_15 = arith.constant dense<0.000000e+00> : vector<4x128xf32>
    %21 = vector.multi_reduction <add>, %20, %cst_15 [1] : vector<4x2x128xf32> to vector<4x128xf32>
    %22 = arith.addf %18, %21 : vector<4x128xf32>
    %c0_16 = arith.constant 0 : index
    %c0_17 = arith.constant 0 : index
    %23 = vector.load %arg9[%c0_16, %c0_17] : memref<4x128xf32, #tpu.memory_space<vmem>>, vector<4x128xf32>
    tpu.vector_store %arg9[%c0_16, %c0_17], %22 {strides = array<i32>} : memref<4x128xf32, #tpu.memory_space<vmem>>, vector<4x128xf32>,
    %c0_18 = arith.constant 0 : index
    %c0_19 = arith.constant 0 : index
    %24 = vector.load %arg10[%c0_18, %c0_19] : memref<4x128xf32, #tpu.memory_space<vmem>>, vector<4x128xf32>
    %25 = arith.mulf %4, %4 : vector<4x2x128xf32>
    %cst_20 = arith.constant dense<0.000000e+00> : vector<4x128xf32>
    %26 = vector.multi_reduction <add>, %25, %cst_20 [1] : vector<4x2x128xf32> to vector<4x128xf32>
    %27 = arith.addf %24, %26 : vector<4x128xf32>
    %c0_21 = arith.constant 0 : index
    %c0_22 = arith.constant 0 : index
    %28 = vector.load %arg10[%c0_21, %c0_22] : memref<4x128xf32, #tpu.memory_space<vmem>>, vector<4x128xf32>
    tpu.vector_store %arg10[%c0_21, %c0_22], %27 {strides = array<i32>} : memref<4x128xf32, #tpu.memory_space<vmem>>, vector<4x128xf32>,
    %c0_i32_23 = arith.constant 0 : i32
    %29 = arith.cmpi eq, %arg2, %c0_i32_23 : i32
    %30 = arith.extui %29 : i1 to i32
    %c0_i32_24 = arith.constant 0 : i32
    %31 = arith.cmpi ne, %30, %c0_i32_24 : i32
    scf.if %31 {
      %c0_25 = arith.constant 0 : index
      %c0_26 = arith.constant 0 : index
      %32 = vector.load %arg8[%c0_25, %c0_26] : memref<4x128xf32, #tpu.memory_space<vmem>>, vector<4x128xf32>
      %c0_27 = arith.constant 0 : index
      %c0_28 = arith.constant 0 : index
      %c0_29 = arith.constant 0 : index
      %c0_30 = arith.constant 0 : index
      %33 = vector.load %arg5[%c0_27, %c0_28, %c0_29, %c0_30] : memref<1x1x4x128xf32, #tpu.memory_space<vmem>>, vector<1x1x4x128xf32>
      %34 = vector.shape_cast %33 : vector<1x1x4x128xf32> to vector<4x128xf32>
      %35 = vector.shape_cast %32 : vector<4x128xf32> to vector<1x1x4x128xf32>
      tpu.vector_store %arg5[%c0_27, %c0_28, %c0_29, %c0_30], %35 {strides = array<i32>} : memref<1x1x4x128xf32, #tpu.memory_space<vmem>>, vector<1x1x4x128xf32>,
      %c0_31 = arith.constant 0 : index
      %c0_32 = arith.constant 0 : index
      %36 = vector.load %arg9[%c0_31, %c0_32] : memref<4x128xf32, #tpu.memory_space<vmem>>, vector<4x128xf32>
      %c0_33 = arith.constant 0 : index
      %c0_34 = arith.constant 0 : index
      %c0_35 = arith.constant 0 : index
      %c0_36 = arith.constant 0 : index
      %37 = vector.load %arg6[%c0_33, %c0_34, %c0_35, %c0_36] : memref<1x1x4x128xf32, #tpu.memory_space<vmem>>, vector<1x1x4x128xf32>
      %38 = vector.shape_cast %37 : vector<1x1x4x128xf32> to vector<4x128xf32>
      %39 = vector.shape_cast %36 : vector<4x128xf32> to vector<1x1x4x128xf32>
      tpu.vector_store %arg6[%c0_33, %c0_34, %c0_35, %c0_36], %39 {strides = array<i32>} : memref<1x1x4x128xf32, #tpu.memory_space<vmem>>, vector<1x1x4x128xf32>,
      %c0_37 = arith.constant 0 : index
      %c0_38 = arith.constant 0 : index
      %40 = vector.load %arg10[%c0_37, %c0_38] : memref<4x128xf32, #tpu.memory_space<vmem>>, vector<4x128xf32>
      %c0_39 = arith.constant 0 : index
      %c0_40 = arith.constant 0 : index
      %c0_41 = arith.constant 0 : index
      %c0_42 = arith.constant 0 : index
      %41 = vector.load %arg7[%c0_39, %c0_40, %c0_41, %c0_42] : memref<1x1x4x128xf32, #tpu.memory_space<vmem>>, vector<1x1x4x128xf32>
      %42 = vector.shape_cast %41 : vector<1x1x4x128xf32> to vector<4x128xf32>
      %43 = vector.shape_cast %40 : vector<4x128xf32> to vector<1x1x4x128xf32>
      tpu.vector_store %arg7[%c0_39, %c0_40, %c0_41, %c0_42], %43 {strides = array<i32>} : memref<1x1x4x128xf32, #tpu.memory_space<vmem>>, vector<1x1x4x128xf32>,
    } else {
    }
    return
  }
  func.func @transform_0(%arg0: i32, %arg1: i32, %arg2: i32) -> (i32, i32, i32, i32) {
    %c1_i32 = arith.constant 1 : i32
    %0 = arith.muli %arg1, %c1_i32 : i32
    %1 = arith.addi %0, %arg2 : i32
    %c0_i32 = arith.constant 0 : i32
    %c0_i32_0 = arith.constant 0 : i32
    %c0_i32_1 = arith.constant 0 : i32
    return %arg0, %c0_i32, %1, %c0_i32_0 : i32, i32, i32, i32
  }
  func.func @transform_1(%arg0: i32, %arg1: i32, %arg2: i32) -> (i32, i32, i32, i32) {
    %c1_i32 = arith.constant 1 : i32
    %0 = arith.muli %arg1, %c1_i32 : i32
    %1 = arith.addi %0, %arg2 : i32
    %c0_i32 = arith.constant 0 : i32
    %c0_i32_0 = arith.constant 0 : i32
    %c0_i32_1 = arith.constant 0 : i32
    return %arg0, %c0_i32, %1, %c0_i32_0 : i32, i32, i32, i32
  }
  func.func @transform_2(%arg0: i32, %arg1: i32, %arg2: i32) -> (i32, i32, i32, i32) {
    %c0_i32 = arith.constant 0 : i32
    %c0_i32_0 = arith.constant 0 : i32
    %c0_i32_1 = arith.constant 0 : i32
    return %arg0, %arg1, %c0_i32, %c0_i32_0 : i32, i32, i32, i32
  }
  func.func @transform_3(%arg0: i32, %arg1: i32, %arg2: i32) -> (i32, i32, i32, i32) {
    %c0_i32 = arith.constant 0 : i32
    %c0_i32_0 = arith.constant 0 : i32
    %c0_i32_1 = arith.constant 0 : i32
    return %arg0, %arg1, %c0_i32, %c0_i32_0 : i32, i32, i32, i32
  }
  func.func @transform_4(%arg0: i32, %arg1: i32, %arg2: i32) -> (i32, i32, i32, i32) {
    %c0_i32 = arith.constant 0 : i32
    %c0_i32_0 = arith.constant 0 : i32
    %c0_i32_1 = arith.constant 0 : i32
    return %arg0, %arg1, %c0_i32, %c0_i32_0 : i32, i32, i32, i32
  }
}

</mosaic_0001>

<bundles_post_ra>
// kernel: tpu_custom_call.1
= control target key start
LH: loop header
LB: loop body
LE: loop exit
PB: predicated region body
PF: predicated region fallthrough
CT: control target
= control target key end

     0   :  { %s1393_s0 = inlined_call_operand.hbm [shape: f32[2,4,2,128], index: 0, kind: input, shape index: {}]   ;;  %s1394_s1 = inlined_call_operand.hbm [shape: s32[2,1,2,128], index: 1, kind: input, shape index: {}]   ;;  %s1395_s2 = inlined_call_operand.hbm [shape: f32[2,1,4,128], index: 2, kind: output, shape index: {0}]   ;;  %s1396_s3 = inlined_call_operand.hbm [shape: f32[2,1,4,128], index: 3, kind: output, shape index: {1}]   ;;  %s1397_s4 = inlined_call_operand.hbm [shape: f32[2,1,4,128], index: 4, kind: output, shape index: {2}]  }
   0x1   :  { %1401 = sst [smem:[#allocation18_spill]] %s1393_s0 }
   0x2   :  { %10 = vsyncpa [#allocation6], 0 }
   0x3   :  { %12 = vsyncpa [#allocation6 + $0x1], 0 }
   0x4   :  { %13 = vsyncpa [#allocation9], 0 }
   0x5   :  { %15 = vsyncpa [#allocation9 + $0x1], 0 }
   0x6   :  { %16 = vsyncpa [#allocation7], 0 }
   0x7   :  { %18 = vsyncpa [#allocation7 + $0x1], 0 }
   0x8   :  { %19 = vsyncpa [#allocation12], 0 }
   0x9   :  { %21 = vsyncpa [#allocation12 + $0x1], 0  ;;  %s1047_s15 = smov 0   ;;  %s1049_s16 = smov 0  }
   0xa   :  { %s1051_s17 = smov 0   ;;  %s1053_s18 = smov 0  }
   0xb   :  { %s1055_s19 = smov 0   ;;  %s1057_s20 = smov 0  }
   0xc LB: > { %s1078_s21 = sadd.s32 4294967295, %s1012_s20   ;;  %s1399_s22 = sadd.s32 4294967294, %s1012_s20   ;;  %s1012_s20 = sphi %s1057_s20, %s27_s20   ;;  %s1008_s19 = sphi %s1055_s19, %s1420_s19   ;;  %s1004_s18 = sphi %s1053_s18, %s1419_s18   ;;  %s1000_s17 = sphi %s1051_s17, %s1418_s17   ;;  %s996_s16 = sphi %s1049_s16, %s1417_s16   ;;  %s992_s15 = sphi %s1047_s15, %s1416_s15  }
   0xd   : > { %s46_s23 = sadd.s32 1, %s1008_s19  ;;  %s57_s24 = sadd.s32 1, %s1000_s17 }
   0xe   : > { %p48_p0 = scmp.ge.s32.totalorder %s46_s23, 2  ;;  %p64_p1 = scmp.ne.s32.totalorder %s1000_s17, %s996_s16 }
   0xf   : > { %p65_p2 = scmp.eq.s32.totalorder %s1012_s20, 0  ;;  %p70_p3 = scmp.ne.s32.totalorder %s996_s16, %s992_s15 }
  0x10   : > { %s1422_s23 = smov (%p48_p0, %s46_s23), 0  ;;  %p71_p5 = scmp.eq.s32.totalorder %s1078_s21, 0 }
  0x11   : > { %p1090_p4 = por %p65_p2, %p64_p1  ;;  %s52_s26 = ssub.s32 %s1008_s19, %s1422_s23 }
  0x12   : > { %p126_p6 = scmp.eq.s32.totalorder %s1078_s21, 1  ;;  %p55_p7 = scmp.eq.s32.totalorder %s52_s26, 0 }
  0x13   : > { %p1098_p8 = por %p71_p5, %p70_p3  ;;  %p132_p10 = scmp.eq.s32.totalorder %s1399_s22, 1 }
  0x14   : > { %p1102_p9 = por %p126_p6, %p64_p1  ;;  %p753_p13 = scmp.lt.s32.totalorder %s1012_s20, 2 }
  0x15   : > { %s1403_s27 = scalar_select %p1098_p8, 1, 0 }
  0x16   : > { %s1404_s28 = scalar_select %p1102_p9, 1, 0 }
  0x17   : > { %s1109_s29 = scalar_select %p55_p7, %s1000_s17, %s57_s24  }
  0x18   : > { %p1111_p11 = por %p132_p10, %p70_p3  ;;  %s1118_s5 = sand.u32 1, %s1000_s17  }
  0x19   : > { %s702_s6 = sshll.u32 %s1118_s5, 3  ;;  %s725_s7 = sshll.u32 %s1008_s19, 7 }
  0x1a   : > { %s1405_s30 = scalar_select %p1111_p11, 1, 0 }
  0x1b   : > { %s1406_s0 = sld [smem:[#allocation18_spill]]  ;;  %s212_s11 = scalar_lea.vmem [#allocation5], %s702_s6 }
  0x1c   : > { %s221_s12 = sshll.u32 %s212_s11, 4  ;;  %p1131_p0 = pnand %p753_p13, %p1090_p4  ;;  %s1127_s12 = int_to_ptr.vmem [resolvable:$true] %s221_s12 }
  0x1d   : > { %s209_s14 = scalar_lea.sflag [#allocation6], %s1118_s5 }
  0x1e   : > { %p808_p3 = pneg %p1131_p0 }
  0x21   : > { %s1125_s10 = scalar_lea.hbm %s1406_s0, %s725_s7  ;;  %s811_s25 = scalar_lea.hbm %s1406_s0, 256 }
  0x22   : > { %s806_s24 = scalar_lea.hbm %s1125_s10, 128  ;;  %p812_p4 = scmp.lt.u32.totalorder %s1125_s10, %s1406_s0 }
  0x23   : > { %p807_p2 = scmp.ne.s32.totalorder %s1125_s10, %s806_s24  ;;  %p813_p7 = scmp.lt.u32.totalorder %s811_s25, %s806_s24 }
  0x24   : > { %p815_p13 = scmp.lt.u32.totalorder %s806_s24, %s1125_s10 }
  0x25   : > { %p809_p5 = pnand %p808_p3, %p807_p2  ;;  %p814_p10 = por %p813_p7, %p812_p4 }
  0x27   : > { %p810_p6 = pneg %p809_p5  ;;  %p816_p12 = por %p815_p13, %p814_p10 }
  0x29   : > { %p817_p1 = pnand %p816_p12, %p810_p6 }
  0x2b   : > { %820 = shalt.err (!%p817_p1)
}
  0x2c   : > { %s821_s9 = scalar_lea.vmem %s1127_s12, 128  ;;  %s1014_s11 = smov [#allocation5]  }
  0x2d   : > { %p822_p2 = scmp.ne.s32.totalorder %s1127_s12, %s821_s9  ;;  %s826_s26 = sshll.u32 %s1014_s11, 4  ;;  %s827_s26 = int_to_ptr.vmem [resolvable:$false] %s826_s26 }
  0x2e   : > { %s828_s6 = scalar_lea.vmem %s827_s26, 256  ;;  %p829_p9 = scmp.lt.s32.totalorder %s1127_s12, %s827_s26 }
  0x2f   : > { %p824_p5 = pnand %p822_p2, %p808_p3  ;;  %p830_p4 = scmp.lt.s32.totalorder %s828_s6, %s821_s9 }
  0x31   : > { %p825_p11 = pneg %p824_p5  ;;  %p831_p7 = por %p830_p4, %p829_p9 }
  0x33   : > { %p832_p10 = pnand %p831_p7, %p825_p11 }
  0x35   : > { %835 = shalt.err (!%p832_p10)
}
  0x36   : > { %s1015_s24 = smov 32   ;;  %s1016_s25 = smov 2  }
  0x37   : > { %739 = dma.hbm_to_vmem [thread:$0]  (!%p1131_p0), %s1125_s10, 128, %s1127_s12, %s209_s14, %s1015_s24, %s1015_s24, %s1016_s25  }
  0x38   : > { %p249_p12 = scmp.lt.s32.totalorder %s1012_s20, 3  ;;  %s705_s7 = sshll.u32 %s1118_s5, 1 }
  0x39   : > { %s706_s8 = sshll.u32 %s1008_s19, 5  ;;  %p1408_p9 = scmp.ge.s32.totalorder %s1012_s20, 1 }
  0x3a   : > { %s1176_s6 = scalar_lea.hbm %s1394_s1, %s706_s8  ;;  %s235_s22 = scalar_lea.vmem [#allocation8], %s705_s7 }
  0x3b   : > { %p1169_p11 = pnand %p1408_p9, %p249_p12  ;;  %s244_s0 = sshll.u32 %s235_s22, 4  ;;  %s245_s0 = int_to_ptr.vmem [resolvable:$true] %s244_s0 }
  0x3c   : > { %s232_s10 = scalar_lea.sflag [#allocation9], %s1118_s5  ;;  %s836_s12 = scalar_lea.hbm %s1176_s6, 32 }
  0x3d   : > { %s1409_s9 = scalar_select %p1169_p11, 1, 0 }
  0x3e   : > { %p837_p1 = scmp.ne.s32.totalorder %s1176_s6, %s836_s12  ;;  %s841_s25 = scalar_lea.hbm %s1394_s1, 64 }
  0x3f   : > { %p842_p2 = scmp.lt.u32.totalorder %s1176_s6, %s1394_s1  ;;  %p843_p5 = scmp.lt.u32.totalorder %s841_s25, %s836_s12 }
  0x40   : > { %p839_p6 = pnand %p837_p1, %p808_p3  ;;  %p845_p7 = scmp.lt.u32.totalorder %s836_s12, %s1176_s6 }
  0x41   : > { %p844_p4 = por %p843_p5, %p842_p2 }
  0x42   : > { %p840_p13 = pneg %p839_p6 }
  0x43   : > { %p846_p10 = por %p845_p7, %p844_p4 }
  0x45   : > { %p847_p12 = pnand %p846_p10, %p840_p13 }
  0x47   : > { %850 = shalt.err (!%p847_p12)
}
  0x48   : > { %s851_s22 = scalar_lea.vmem %s245_s0, 32  ;;  %s1017_s5 = smov [#allocation8]  }
  0x49   : > { %p852_p9 = scmp.ne.s32.totalorder %s245_s0, %s851_s22  ;;  %s856_s7 = sshll.u32 %s1017_s5, 4  ;;  %s857_s7 = int_to_ptr.vmem [resolvable:$false] %s856_s7 }
  0x4a   : > { %s858_s26 = scalar_lea.vmem %s857_s7, 64  ;;  %p859_p8 = scmp.lt.s32.totalorder %s245_s0, %s857_s7 }
  0x4b   : > { %p854_p1 = pnand %p852_p9, %p808_p3  ;;  %p860_p11 = scmp.lt.s32.totalorder %s858_s26, %s851_s22 }
  0x4d   : > { %p855_p6 = pneg %p854_p1  ;;  %p861_p2 = por %p860_p11, %p859_p8 }
  0x4f   : > { %p862_p5 = pnand %p861_p2, %p855_p6 }
  0x51   : > { %865 = shalt.err (!%p862_p5)
}
  0x52   : > { %742 = dma.hbm_to_vmem [thread:$0]  (!%p1131_p0), %s1176_s6, 32, %s245_s0, %s232_s10  }
  0x53   : > { %p1410_p13 = scmp.ne.s32.totalorder %s1409_s9, 0 }
  0x54   : > { %s1201_s12 = sand.u32 (!%p1410_p13), 1, %s996_s16   ;;  %p1411_p3 = scmp.ne.s32.totalorder (!%p1410_p13), %s1403_s27, 0 }
  0x55   : > { %253 = sbr.rel (%p1410_p13) target bundleno = 189 (0xbd), region = 28  ;;  %s708_s14 = sshll.u32 (!%p1410_p13), %s1201_s12, 3 }
  0x56   : > { %s256_s24 = scalar_lea.sflag (!%p1410_p13), [#allocation6], %s1201_s12  ;;  %s259_s25 = scalar_lea.vmem (!%p1410_p13), [#allocation5], %s708_s14 }
  0x5c   : > { %975 = dma.done.wait (%p1411_p3), %s256_s24, 128  }
  0x5d   : > { %977 = vsyncadd (%p1411_p3), %s256_s24, 4294967168  ;;  %s709_s0 = sshll.u32 %s1201_s12, 1  ;;  %s265_s13 = scalar_lea.sflag [#allocation9], %s1201_s12 }
  0x5e   : > { %s268_s9 = scalar_lea.vmem [#allocation8], %s709_s0 }
  0x5f   : > { %979 = dma.done.wait (%p1411_p3), %s265_s13, 32  }
  0x60   : > { %981 = vsyncadd (%p1411_p3), %s265_s13, 4294967264  ;;  %v1018_v0 = vmov 0.0   ;;  %v321_v1 = vld [vmem:[%s268_s9] sm:$0x3]  ;;  %vm331_vm0 = vcmask 1041408   ;;  %vm364_vm5 = vcmask 1041409  }
  0x61   : > { %315 = vst [vmem:[#allocation3] sm:$0xf] %v1018_v0  ;;  %314 = vst [vmem:[#allocation2] sm:$0xf] %v1018_v0  ;;  %v1215_v2 = vld [vmem:[%s259_s25] sm:$0x3] }
  0x62   : > { %316 = vst [vmem:[#allocation4] sm:$0xf] %v1018_v0  ;;  %vm322_vm1 = vcmp.eq.s32.totalorder %v321_v1, 0  ;;  %vm323_vm2 = vcmp.eq.s32.totalorder %v321_v1, 1  ;;  %vm324_vm3 = vcmp.eq.s32.totalorder %v321_v1, 2  ;;  %vm325_vm4 = vcmp.eq.s32.totalorder %v321_v1, 3 }
  0x63   : > { %v1217_v3 = vld [vmem:[%s259_s25 + $0x2] sm:$0x3]  ;;  %v713_v4 = vsel %vm322_vm1, 1.0, %v1018_v0  ;;  %v714_v5 = vsel %vm323_vm2, 1.0, %v1018_v0  ;;  %v715_v6 = vsel %vm324_vm3, 1.0, %v1018_v0  ;;  %v716_v7 = vsel %vm325_vm4, 1.0, %v1018_v0 }
  0x64   : > { %v319_v8 = vld [vmem:[%s259_s25 + $0x4] sm:$0x3]  ;;  %v382_v9 = vsel %vm331_vm0, %v713_v4, 0.0  ;;  %v389_v10 = vsel %vm331_vm0, %v714_v5, 0.0  ;;  %v396_v11 = vsel %vm331_vm0, %v715_v6, 0.0  ;;  %v403_v12 = vsel %vm331_vm0, %v716_v7, 0.0 }
  0x65   : > { %v1227_v13 = vld [vmem:[%s259_s25 + $0x6] sm:$0x3]  ;;  %v383_v14 = vrot.slane %v382_v9, 4  ;;  %v390_v15 = vrot.slane %v389_v10, 4  ;;  %v397_v16 = vrot.slane %v396_v11, 4  ;;  %v404_v17 = vrot.slane %v403_v12, 4 }
  0x66   : > { %v327_v18 = vsel %vm322_vm1, %v1215_v2, 0.0  ;;  %v328_v19 = vsel %vm323_vm2, %v1217_v3, 0.0  ;;  %v329_v20 = vsel %vm324_vm3, %v319_v8, 0.0  ;;  %v330_v21 = vsel %vm325_vm4, %v1227_v13, 0.0  ;;  %s1247_s27 = sshll.u32 %s1201_s12, 2  ;;  %s477_s8 = sand.u32 1, %s1078_s21  }
  0x67   : > { %vm366_vm6 = vcmask 1042434   ;;  %v384_v22 = vadd.f32 %v383_v14, %v382_v9  ;;  %v391_v23 = vadd.f32 %v390_v15, %v389_v10  ;;  %v398_v24 = vadd.f32 %v397_v16, %v396_v11  ;;  %s300_s6 = scalar_lea.vmem [#allocation11], %s1247_s27  ;;  %s1262_s11 = sshll.u32 %s1004_s18, 6 }
  0x68   : > { %v405_v25 = vadd.f32 %v404_v17, %v403_v12  ;;  %vm368_vm7 = vcmask 1043459   ;;  %v332_v26 = vsel %vm331_vm0, %v327_v18, 0.0  ;;  %v339_v27 = vsel %vm331_vm0, %v328_v19, 0.0  ;;  %v373_v62 = vld [vmem:[#allocation3] sm:$0xf]  ;;  %s511_s10 = sshll.u32 %s300_s6, 4  ;;  %s1270_s7 = scalar_lea.hbm %s1396_s3, %s1262_s11  ;;  %s1264_s10 = int_to_ptr.vmem [resolvable:$true] %s511_s10 }
  0x69   : > { %v346_v28 = vsel %vm331_vm0, %v329_v20, 0.0  ;;  %v353_v29 = vsel %vm331_vm0, %v330_v21, 0.0  ;;  %v385_v30 = vrot.slane %v384_v22, 2  ;;  %v392_v31 = vrot.slane %v391_v23, 2  ;;  %v326_v20 = vld [vmem:[#allocation2] sm:$0xf] }
  0x6a   : > { %v399_v32 = vrot.slane %v398_v24, 2  ;;  %v406_v33 = vrot.slane %v405_v25, 2  ;;  %v333_v34 = vrot.slane %v332_v26, 4  ;;  %v340_v35 = vrot.slane %v339_v27, 4  ;;  %s293_s18 = scalar_lea.vmem [#allocation10], %s1247_s27  ;;  %s1277_s26 = scalar_lea.sflag [#allocation12], %s477_s8 }
  0x6b   : > { %v347_v36 = vrot.slane %v346_v28, 4  ;;  %v354_v37 = vrot.slane %v353_v29, 4  ;;  %v386_v38 = vadd.f32 %v385_v30, %v384_v22  ;;  %v393_v39 = vadd.f32 %v392_v31, %v391_v23  ;;  %s1275_s21 = sshll.u32 %s293_s18, 4  ;;  %s866_s14 = scalar_lea.vmem %s1264_s10, 64  ;;  %s1302_s21 = int_to_ptr.vmem [resolvable:$true] %s1275_s21 }
  0x6c   : > { %v400_v40 = vadd.f32 %v399_v32, %v398_v24  ;;  %v407_v41 = vadd.f32 %v406_v33, %v405_v25  ;;  %v334_v42 = vadd.f32 %v333_v34, %v332_v26  ;;  %v341_v43 = vadd.f32 %v340_v35, %v339_v27  ;;  %p867_p8 = scmp.ne.s32.totalorder %s1264_s10, %s866_s14  ;;  %p1412_p0 = scmp.ne.s32.totalorder %s1404_s28, 0 }
  0x6d   : > { %v348_v44 = vadd.f32 %v347_v36, %v346_v28  ;;  %v355_v45 = vadd.f32 %v354_v37, %v353_v29  ;;  %v387_v46 = vrot.slane %v386_v38, 1  ;;  %v394_v47 = vrot.slane %v393_v39, 1  ;;  %s1019_s24 = smov [#allocation11]  }
  0x6e   : > { %v401_v48 = vrot.slane %v400_v40, 1  ;;  %v408_v49 = vrot.slane %v407_v41, 1  ;;  %v335_v50 = vrot.slane %v334_v42, 2  ;;  %v342_v51 = vrot.slane %v341_v43, 2  ;;  %p868_p11 = pnand %p867_p8, %p1412_p0  ;;  %s870_s25 = sshll.u32 %s1019_s24, 4  ;;  %s871_s25 = int_to_ptr.vmem [resolvable:$false] %s870_s25 }
  0x6f   : > { %v349_v52 = vrot.slane %v348_v44, 2  ;;  %v356_v53 = vrot.slane %v355_v45, 2  ;;  %v388_v54 = vadd.f32 %v387_v46, %v386_v38  ;;  %v395_v55 = vadd.f32 %v394_v47, %v393_v39  ;;  %s872_s0 = scalar_lea.vmem %s871_s25, 128  ;;  %p873_p7 = scmp.lt.s32.totalorder %s1264_s10, %s871_s25 }
  0x70   : > { %v402_v56 = vadd.f32 %v401_v48, %v400_v40  ;;  %v409_v57 = vadd.f32 %v408_v49, %v407_v41  ;;  %v336_v58 = vadd.f32 %v335_v50, %v334_v42  ;;  %v343_v59 = vadd.f32 %v342_v51, %v341_v43  ;;  %p869_p4 = pneg %p868_p11  ;;  %p874_p10 = scmp.lt.s32.totalorder %s872_s0, %s866_s14 }
  0x71   : > { %v350_v60 = vadd.f32 %v349_v52, %v348_v44  ;;  %v357_v61 = vadd.f32 %v356_v53, %v355_v45  ;;  %v414_v63 = vsel %vm364_vm5, %v395_v55, %v388_v54  ;;  %v421_v0 = vmul.f32 %v1215_v2, %v1215_v2 }
  0x72   : > { %v422_v1 = vmul.f32 %v1217_v3, %v1217_v3  ;;  %v423_v4 = vmul.f32 %v319_v8, %v319_v8  ;;  %v415_v5 = vsel %vm366_vm6, %v402_v56, %v414_v63  ;;  %v337_v6 = vrot.slane %v336_v58, 1  ;;  %p875_p12 = por %p874_p10, %p873_p7 }
  0x73   : > { %v344_v7 = vrot.slane %v343_v59, 1  ;;  %v351_v9 = vrot.slane %v350_v60, 1  ;;  %v416_v10 = vsel %vm368_vm7, %v409_v57, %v415_v5  ;;  %v358_v11 = vrot.slane %v357_v61, 1 }
  0x74   : > { %v424_v12 = vmul.f32 %v1227_v13, %v1227_v13  ;;  %v425_v14 = vsel %vm331_vm0, %v421_v0, 0.0  ;;  %v418_v2 = vadd.f32 %v416_v10, %v373_v62  ;;  %v338_v15 = vadd.f32 %v337_v6, %v336_v58  ;;  %p876_p9 = pnand %p875_p12, %p869_p4 }
  0x75   : > { %v345_v16 = vadd.f32 %v344_v7, %v343_v59  ;;  %v352_v3 = vadd.f32 %v351_v9, %v350_v60  ;;  %v359_v8 = vadd.f32 %v358_v11, %v357_v61  ;;  %v426_v17 = vrot.slane %v425_v14, 4 }
  0x76   : > { %v432_v18 = vsel %vm331_vm0, %v422_v1, 0.0  ;;  %v439_v19 = vsel %vm331_vm0, %v423_v4, 0.0  ;;  %419 = vst [vmem:[#allocation3] sm:$0xf] %v418_v2  ;;  %v446_v23 = vsel %vm331_vm0, %v424_v12, 0.0 }
  0x77   : > { %v365_v21 = vsel %vm364_vm5, %v345_v16, %v338_v15  ;;  %v433_v13 = vrot.slane %v432_v18, 4  ;;  %v440_v22 = vrot.slane %v439_v19, 4  ;;  %v427_v25 = vadd.f32 %v426_v17, %v425_v14 }
  0x78   : > { %v367_v24 = vsel %vm366_vm6, %v352_v3, %v365_v21  ;;  %v447_v26 = vrot.slane %v446_v23, 4 }
  0x79   : > { %v369_v27 = vsel %vm368_vm7, %v359_v8, %v367_v24  ;;  %v434_v28 = vadd.f32 %v433_v13, %v432_v18  ;;  %v441_v29 = vadd.f32 %v440_v22, %v439_v19  ;;  %v428_v31 = vrot.slane %v427_v25, 2 }
  0x7a   : > { %v371_v30 = vadd.f32 %v369_v27, %v326_v20  ;;  %v448_v32 = vadd.f32 %v447_v26, %v446_v23 }
  0x7b   : > { %v435_v33 = vrot.slane %v434_v28, 2  ;;  %v442_v34 = vrot.slane %v441_v29, 2  ;;  %v429_v35 = vadd.f32 %v428_v31, %v427_v25 }
  0x7c   : > { %372 = vst [vmem:[#allocation2] sm:$0xf] %v371_v30  ;;  %v449_v36 = vrot.slane %v448_v32, 2 }
  0x7d   : > { %v436_v37 = vadd.f32 %v435_v33, %v434_v28  ;;  %v443_v38 = vadd.f32 %v442_v34, %v441_v29  ;;  %v430_v39 = vrot.slane %v429_v35, 1  ;;  %v468_v41 = vld [vmem:[#allocation3] sm:$0xf] }
  0x7e   : > { %v450_v40 = vadd.f32 %v449_v36, %v448_v32  ;;  %469 = vst [vmem:[%s300_s6] sm:$0xf] %v468_v41 }
  0x7f   : > { %v437_v42 = vrot.slane %v436_v37, 1  ;;  %v444_v43 = vrot.slane %v443_v38, 1  ;;  %v431_v44 = vadd.f32 %v430_v39, %v429_v35 }
  0x80   : > { %v451_v45 = vrot.slane %v450_v40, 1 }
  0x81   : > { %879 = shalt.err (!%p876_p9)
}
  0x82   : > { %s880_s13 = scalar_lea.hbm %s1270_s7, 64  ;;  %s884_s8 = scalar_lea.hbm %s1396_s3, 128 }
  0x83   : > { %p881_p1 = scmp.ne.s32.totalorder %s1270_s7, %s880_s13  ;;  %p885_p5 = scmp.lt.u32.totalorder %s1270_s7, %s1396_s3 }
  0x84   : > { %p886_p13 = scmp.lt.u32.totalorder %s884_s8, %s880_s13  ;;  %p888_p8 = scmp.lt.u32.totalorder %s880_s13, %s1270_s7 }
  0x85   : > { %p882_p6 = pnand %p881_p1, %p1412_p0 }
  0x86   : > { %p887_p3 = por %p886_p13, %p885_p5 }
  0x87   : > { %p883_p2 = pneg %p882_p6 }
  0x88   : > { %p889_p11 = por %p888_p8, %p887_p3 }
  0x8a   : > { %p890_p4 = pnand %p889_p11, %p883_p2 }
  0x8c   : > { %893 = shalt.err (!%p890_p4)
}
  0x8d   : > { %731 = dma.vmem_to_hbm [thread:$0]  (%p1412_p0), %s1264_s10, 64, %s1270_s7, %s1277_s26   ;;  %v438_v46 = vadd.f32 %v437_v42, %v436_v37  ;;  %v445_v47 = vadd.f32 %v444_v43, %v443_v38  ;;  %v452_v48 = vadd.f32 %v451_v45, %v450_v40  ;;  %v420_v49 = vld [vmem:[#allocation4] sm:$0xf]  ;;  %v466_v51 = vld [vmem:[#allocation2] sm:$0xf] }
  0x8e   : > { %s1308_s25 = scalar_lea.hbm %s1395_s2, %s1262_s11  ;;  %467 = vst [vmem:[%s293_s18] sm:$0xf] %v466_v51  ;;  %s473_s10 = scalar_lea.sflag [#allocation7], %s1201_s12 }
  0x8f   : > { %v457_v50 = vsel %vm364_vm5, %v438_v46, %v431_v44  ;;  %s894_s7 = scalar_lea.vmem %s1302_s21, 64  ;;  %s1020_s0 = smov [#allocation10]  }
  0x90   : > { %v458_v52 = vsel %vm366_vm6, %v445_v47, %v457_v50  ;;  %p895_p7 = scmp.ne.s32.totalorder %s1302_s21, %s894_s7  ;;  %s898_s13 = sshll.u32 %s1020_s0, 4  ;;  %s899_s13 = int_to_ptr.vmem [resolvable:$false] %s898_s13 }
  0x91   : > { %v459_v53 = vsel %vm368_vm7, %v452_v48, %v458_v52  ;;  %s900_s9 = scalar_lea.vmem %s899_s13, 128  ;;  %p901_p9 = scmp.lt.s32.totalorder %s1302_s21, %s899_s13 }
  0x92   : > { %p896_p10 = pnand %p895_p7, %p1412_p0  ;;  %p902_p1 = scmp.lt.s32.totalorder %s900_s9, %s894_s7 }
  0x94   : > { %p897_p12 = pneg %p896_p10  ;;  %p903_p6 = por %p902_p1, %p901_p9 }
  0x96   : > { %p904_p2 = pnand %p903_p6, %p897_p12 }
  0x98   : > { %907 = shalt.err (!%p904_p2)
}
  0x99   : > { %s908_s12 = scalar_lea.hbm %s1308_s25, 64  ;;  %s912_s8 = scalar_lea.hbm %s1395_s2, 128 }
  0x9a   : > { %p909_p5 = scmp.ne.s32.totalorder %s1308_s25, %s908_s12  ;;  %p913_p8 = scmp.lt.u32.totalorder %s1308_s25, %s1395_s2 }
  0x9b   : > { %p914_p11 = scmp.lt.u32.totalorder %s912_s8, %s908_s12  ;;  %p916_p7 = scmp.lt.u32.totalorder %s908_s12, %s1308_s25 }
  0x9c   : > { %p910_p13 = pnand %p909_p5, %p1412_p0 }
  0x9d   : > { %p915_p4 = por %p914_p11, %p913_p8 }
  0x9e   : > { %p911_p3 = pneg %p910_p13 }
  0x9f   : > { %p917_p10 = por %p916_p7, %p915_p4 }
  0xa1   : > { %p918_p12 = pnand %p917_p10, %p911_p3 }
  0xa3   : > { %921 = shalt.err (!%p918_p12)
}
  0xa4   : > { %730 = dma.vmem_to_hbm [thread:$0]  (%p1412_p0), %s1302_s21, 64, %s1308_s25, %s473_s10   ;;  %v461_v54 = vadd.f32 %v459_v53, %v420_v49 }
  0xa5   : > { %s307_s14 = scalar_lea.vmem [#allocation13], %s1247_s27  ;;  %s1344_s13 = scalar_lea.hbm %s1397_s4, %s1262_s11 }
  0xa6   : > { %462 = vst [vmem:[#allocation4] sm:$0xf] %v461_v54  ;;  %s525_s24 = sshll.u32 %s307_s14, 4  ;;  %s1021_s21 = smov [#allocation13]   ;;  %s1338_s24 = int_to_ptr.vmem [resolvable:$true] %s525_s24 }
  0xa7   : > { %s922_s9 = scalar_lea.vmem %s1338_s24, 64  ;;  %s926_s27 = sshll.u32 %s1021_s21, 4  ;;  %s927_s27 = int_to_ptr.vmem [resolvable:$false] %s926_s27 }
  0xa8   : > { %p923_p9 = scmp.ne.s32.totalorder %s1338_s24, %s922_s9  ;;  %s928_s25 = scalar_lea.vmem %s927_s27, 128 }
  0xa9   : > { %p929_p2 = scmp.lt.s32.totalorder %s1338_s24, %s927_s27  ;;  %p930_p5 = scmp.lt.s32.totalorder %s928_s25, %s922_s9 }
  0xaa   : > { %p924_p1 = pnand %p923_p9, %p1412_p0 }
  0xab   : > { %p931_p13 = por %p930_p5, %p929_p2 }
  0xac   : > { %p925_p6 = pneg %p924_p1 }
  0xad   : > { %v470_v55 = vld [vmem:[#allocation4] sm:$0xf] }
  0xae   : > { %471 = vst [vmem:[%s307_s14] sm:$0xf] %v470_v55  ;;  %p932_p3 = pnand %p931_p13, %p925_p6 }
  0xb0   : > { %935 = shalt.err (!%p932_p3)
}
  0xb1   : > { %s936_s11 = scalar_lea.hbm %s1344_s13, 64  ;;  %s940_s18 = scalar_lea.hbm %s1397_s4, 128 }
  0xb2   : > { %p937_p8 = scmp.ne.s32.totalorder %s1344_s13, %s936_s11  ;;  %p941_p7 = scmp.lt.u32.totalorder %s1344_s13, %s1397_s4 }
  0xb3   : > { %p942_p10 = scmp.lt.u32.totalorder %s940_s18, %s936_s11  ;;  %p944_p9 = scmp.lt.u32.totalorder %s936_s11, %s1344_s13 }
  0xb4   : > { %p938_p11 = pnand %p937_p8, %p1412_p0 }
  0xb5   : > { %p943_p12 = por %p942_p10, %p941_p7 }
  0xb6   : > { %p939_p4 = pneg %p938_p11 }
  0xb7   : > { %p945_p1 = por %p944_p9, %p943_p12 }
  0xb9   : > { %p946_p6 = pnand %p945_p1, %p939_p4 }
  0xbb   : > { %949 = shalt.err (!%p946_p6)
}
  0xbc   : > { %732 = dma.vmem_to_hbm [thread:$0]  (%p1412_p0), %s1338_s24, 64, %s1344_s13, %s1277_s26  }
  0xbd PF: > { %s537_s22 = sand.u32 1, %s992_s15   ;;  %p1413_p2 = scmp.ne.s32.totalorder %s1405_s30, 0 }
  0xbe   : > { %p1414_p5 = scmp.ge.s32.totalorder %s1012_s20, 2  ;;  %s538_s5 = scalar_lea.sflag [#allocation7], %s537_s22 }
  0xc0   : > { %p744_p13 = pnand %p1414_p5, %p1413_p2 }
  0xc2   : > { %983 = dma.done.wait (!%p744_p13), %s538_s5, 64  }
  0xc3   : > { %985 = vsyncadd (!%p744_p13), %s538_s5, 4294967232  ;;  %s1415_s14 = sadd.s32 4294967294, %s1012_s20  }
  0xc4   : > { %s546_s7 = sand.u32 1, %s1415_s14  }
  0xc5   : > { %s547_s0 = scalar_lea.sflag [#allocation12], %s546_s7 }
  0xc6   : > { %987 = dma.done.wait (!%p744_p13), %s547_s0, 128  }
  0xc7   : > { %989 = vsyncadd (!%p744_p13), %s547_s0, 4294967168  ;;  %s27_s20 = sadd.s32 1, %s1012_s20   ;;  %s1416_s15 = smov %s996_s16 }
  0xc8   : > { %p24_p0 = scmp.ge.s32.totalorder %s27_s20, 4   ;;  %s1417_s16 = smov %s1000_s17 }
  0xc9   : > { %s1418_s17 = smov %s1109_s29  ;;  %s1419_s18 = smov %s1008_s19 }
  0xca   : > { %s1420_s19 = smov %s1422_s23  ;;  %26 = sbr.rel (!%p24_p0) target bundleno = 12 (0xc), region = 126 }
  0xd1   :  { %561 = vsyncpa [#allocation6], 1 }
  0xd2   :  { %563 = vsyncpa [#allocation6 + $0x1], 1 }
  0xd3   :  { %564 = vsyncpa [#allocation9], 1 }
  0xd4   :  { %566 = vsyncpa [#allocation9 + $0x1], 1 }
  0xd5   :  { %567 = vsyncpa [#allocation7], 1 }
  0xd6   :  { %569 = vsyncpa [#allocation7 + $0x1], 1 }
  0xd7   :  { %570 = vsyncpa [#allocation12], 1 }
  0xd8   :  { %572 = vsyncpa [#allocation12 + $0x1], 1 }

</bundles_post_ra>
